<compile_context>
chip_gen: v7x
topology: tpu7x:2x2x1
jax: 0.10.0
libtpu: 0.0.40
codegen_flags: <defaults>
</compile_context>

<pallas_src>
import jax
import jax.numpy as jnp
from jax.experimental import pallas as pl
from jax.experimental.pallas import tpu as pltpu

HIDDEN = 384


def _row_tile(rows, compute_dtype):
    # Keep double-buffered (in + out) tile traffic around <=10 MiB so the default scoped
    # VMEM (16 MiB v5e / 32 MiB v6e,v7x) is never exceeded on any generation, while tiles
    # are big enough to amortize per-step grid overhead and MXU weight pushes.
    tile = 2048 if compute_dtype == jnp.bfloat16 else 1024
    return min(tile, rows)


def _gate_kernel(g_ref, wp_ref, wg_ref, gate_ref):
    # Folded gate weight: wfold[0, i] = sum_o Wg[0, o] * Wp[o, i]  (canonical contraction;
    # bias terms bp/bg are token-constant logit offsets and cancel in the softmax).
    wfold = jnp.dot(wg_ref[...], wp_ref[...], preferred_element_type=jnp.float32)  # [1, D]
    x = g_ref[...]                                                                  # [B, N, D] f32
    logits = jnp.sum(x * wfold[None, :, :], axis=-1)                                # [B, N]
    m = jnp.max(logits, axis=1, keepdims=True)                                      # softmax over tokens (dim=1)
    e = jnp.exp(logits - m)
    gate_ref[...] = (e / jnp.sum(e, axis=1, keepdims=True)).astype(gate_ref.dtype)


def _proj_kernel(x_ref, wpt_ref, bp_ref, out_ref):
    # x_tile [tr, D] @ Wp.T [D, D] + bp, accumulated in f32 regardless of operand dtype.
    out_ref[...] = (
        jnp.dot(x_ref[...], wpt_ref[...], preferred_element_type=jnp.float32) + bp_ref[...]
    ).astype(out_ref.dtype)


def graph_gate_v3_forward(params, graph_emb, node_emb=None, pretrain=True, use_bf16=True):
    wp = params["wp"]                       # [384, 384] PyTorch (out, in) layout
    bp = params["bp"].reshape(1, HIDDEN)    # [1, 384]
    wg = params["wg"]                       # [1, 384]
    # params["bg"] intentionally unused: token-constant logit offset cancels in softmax.
    B, N, D = graph_emb.shape

    # --- Gate path: one tiny ungridded kernel, f32 operands. -------------------------------
    gate = pl.pallas_call(
        _gate_kernel,
        out_shape=jax.ShapeDtypeStruct((B, N), jnp.float32),
        in_specs=[pl.BlockSpec(memory_space=pltpu.MemorySpace.VMEM)] * 3,
        out_specs=pl.BlockSpec(memory_space=pltpu.MemorySpace.VMEM),
    )(graph_emb.astype(jnp.float32), wp.astype(jnp.float32), wg.astype(jnp.float32))

    if not pretrain or node_emb is None:
        return gate

    # --- Node projection path: row-tiled, pipelined, megacore-parallel. --------------------
    compute_dtype = jnp.bfloat16 if use_bf16 else jnp.float32
    Bn, M, _ = node_emb.shape
    rows = Bn * M
    x2 = node_emb.reshape(rows, D).astype(compute_dtype)     # glue reshape + cast outside kernel
    wpt = wp.T.astype(compute_dtype)                          # one-time transpose -> canonical [K,N] MXU weights
    tr = _row_tile(rows, compute_dtype)
    grid = (pl.cdiv(rows, tr),)

    nf2 = pl.pallas_call(
        _proj_kernel,
        out_shape=jax.ShapeDtypeStruct((rows, D), jnp.float32),
        grid=grid,
        in_specs=[
            pl.BlockSpec((tr, D), lambda i: (i, 0)),          # node rows: pipelined tiles
            pl.BlockSpec((D, D), lambda i: (0, 0)),           # Wp.T: grid-invariant, DMA'd once
            pl.BlockSpec((1, D), lambda i: (0, 0)),           # bp (kept f32)
        ],
        out_specs=pl.BlockSpec((tr, D), lambda i: (i, 0)),
        # No grid-invariant output block in this call -> row axis can shard across both
        # v7x TensorCores.
        compiler_params=pltpu.CompilerParams(dimension_semantics=("parallel",)),
    )(x2, wpt, bp.astype(jnp.float32))

    # NOTE: torch.squeeze would make a B==1 batch produce shape (N,) and then crash on
    # softmax(dim=1) in the original module, so B>1 is assumed; we emit (B, N) directly.
    return gate, nf2.reshape(Bn, M, D)


def _init_params(key):
    # Deterministic init matching nn.Linear defaults: uniform(-1/sqrt(fan_in), 1/sqrt(fan_in)).
    k1, k2, k3, k4 = jax.random.split(key, 4)
    bound = 1.0 / (HIDDEN ** 0.5)
    return {
        "wp": jax.random.uniform(k1, (HIDDEN, HIDDEN), jnp.float32, -bound, bound),
        "bp": jax.random.uniform(k2, (HIDDEN,), jnp.float32, -bound, bound),
        "wg": jax.random.uniform(k3, (1, HIDDEN), jnp.float32, -bound, bound),
        "bg": jax.random.uniform(k4, (1,), jnp.float32, -bound, bound),
    }


def _reference(params, graph_emb, node_emb):
    proj = graph_emb @ params["wp"].T + params["bp"]
    logits = (proj @ params["wg"].T + params["bg"])[..., 0]
    gate = jax.nn.softmax(logits, axis=1)
    node_features = node_emb @ params["wp"].T + params["bp"]
    return gate, node_features


if __name__ == "__main__":
    key = jax.random.PRNGKey(0)
    kp, kg, kn = jax.random.split(key, 3)
    params = _init_params(kp)

    B, N, M = 2, 8, 8
    graph_emb = jax.random.normal(kg, (B, N, HIDDEN), jnp.float32)
    node_emb = jax.random.normal(kn, (B, M, HIDDEN), jnp.float32)

    ref_gate, ref_nf = _reference(params, graph_emb, node_emb)

    # Default (bf16 operands, f32 accumulation) fused-forward path.
    gatevalues, node_features = graph_gate_v3_forward(
        params, graph_emb, node_emb, pretrain=True, use_bf16=True)
    gatevalues = jax.block_until_ready(gatevalues)
    node_features = jax.block_until_ready(node_features)
    assert gatevalues.shape == (B, N)
    assert node_features.shape == (B, M, HIDDEN)
    assert jnp.allclose(gatevalues, ref_gate, rtol=1e-4, atol=1e-5)
    assert jnp.allclose(node_features, ref_nf, rtol=2e-2, atol=2e-2)   # bf16 operand tolerance

    # f32 fallback path (tight tolerance).
    gate_f32, nf_f32 = graph_gate_v3_forward(
        params, graph_emb, node_emb, pretrain=True, use_bf16=False)
    gate_f32 = jax.block_until_ready(gate_f32)
    nf_f32 = jax.block_until_ready(nf_f32)
    assert jnp.allclose(gate_f32, ref_gate, rtol=1e-4, atol=1e-5)
    assert jnp.allclose(nf_f32, ref_nf, rtol=1e-4, atol=1e-4)

    # Gate-only path (pretrain=False).
    gate_only = jax.block_until_ready(graph_gate_v3_forward(params, graph_emb, pretrain=False))
    assert gate_only.shape == (B, N)
    assert jnp.allclose(gate_only, ref_gate, rtol=1e-4, atol=1e-5)

    print("KERNEL_OK")
</pallas_src>

<mosaic_0001>
module attributes {stable_mosaic.version = 11 : i64} {
  func.func @_gate_kernel(%arg0: memref<2x8x384xf32, #tpu.memory_space<vmem>>, %arg1: memref<384x384xf32, #tpu.memory_space<vmem>>, %arg2: memref<1x384xf32, #tpu.memory_space<vmem>>, %arg3: memref<2x8xf32, #tpu.memory_space<vmem>>) attributes {dimension_semantics = [], scalar_prefetch = 0 : i64, scratch_operands = 0 : i64, tpu.core_type = #tpu.core_type<tc>} {
    %c0 = arith.constant 0 : index
    %c0_0 = arith.constant 0 : index
    %0 = vector.load %arg2[%c0, %c0_0] : memref<1x384xf32, #tpu.memory_space<vmem>>, vector<1x384xf32>
    %c0_1 = arith.constant 0 : index
    %c0_2 = arith.constant 0 : index
    %1 = vector.load %arg1[%c0_1, %c0_2] : memref<384x384xf32, #tpu.memory_space<vmem>>, vector<384x384xf32>
    %cst = arith.constant dense<0.000000e+00> : vector<1x384xf32>
    %2 = tpu.matmul %0, %1, %cst {dimension_numbers = #tpu.dot_dimension_numbers<[1], [0], [0], [1], [0, 0, 1, 1], [], []>} : vector<1x384xf32>, vector<384x384xf32>, vector<1x384xf32> -> vector<1x384xf32>
    %c0_3 = arith.constant 0 : index
    %c0_4 = arith.constant 0 : index
    %c0_5 = arith.constant 0 : index
    %3 = vector.load %arg0[%c0_3, %c0_4, %c0_5] : memref<2x8x384xf32, #tpu.memory_space<vmem>>, vector<2x8x384xf32>
    %4 = vector.shape_cast %2 : vector<1x384xf32> to vector<1x1x384xf32>
    %5 = vector.broadcast %4 : vector<1x1x384xf32> to vector<2x8x384xf32>
    %6 = arith.mulf %3, %5 : vector<2x8x384xf32>
    %cst_6 = arith.constant dense<0.000000e+00> : vector<2x8xf32>
    %7 = vector.multi_reduction <add>, %6, %cst_6 [2] : vector<2x8x384xf32> to vector<2x8xf32>
    %cst_7 = arith.constant dense<0xFF800000> : vector<2xf32>
    %8 = vector.multi_reduction <maximumf>, %7, %cst_7 [1] : vector<2x8xf32> to vector<2xf32>
    %9 = vector.shape_cast %8 : vector<2xf32> to vector<2x1xf32>
    %10 = vector.broadcast %9 : vector<2x1xf32> to vector<2x8xf32>
    %11 = arith.subf %7, %10 : vector<2x8xf32>
    %12 = math.exp %11 : vector<2x8xf32>
    %cst_8 = arith.constant dense<0.000000e+00> : vector<2xf32>
    %13 = vector.multi_reduction <add>, %12, %cst_8 [1] : vector<2x8xf32> to vector<2xf32>
    %14 = vector.shape_cast %13 : vector<2xf32> to vector<2x1xf32>
    %15 = vector.broadcast %14 : vector<2x1xf32> to vector<2x8xf32>
    %16 = arith.divf %12, %15 : vector<2x8xf32>
    %c0_9 = arith.constant 0 : index
    %c0_10 = arith.constant 0 : index
    %17 = vector.load %arg3[%c0_9, %c0_10] : memref<2x8xf32, #tpu.memory_space<vmem>>, vector<2x8xf32>
    tpu.vector_store %arg3[%c0_9, %c0_10], %16 {strides = array<i32>} : memref<2x8xf32, #tpu.memory_space<vmem>>, vector<2x8xf32>,
    return
  }
}

</mosaic_0001>

<bundles_post_ra>
// kernel: tpu_custom_call.1
= control target key start
LH: loop header
LB: loop body
LE: loop exit
PB: predicated region body
PF: predicated region fallthrough
CT: control target
= control target key end

     0   :  { %8 = vsyncpa [#allocation3], 0  ;;  %s1071_s0 = inlined_call_operand.hbm [shape: f32[2,8,384], index: 0, kind: input, shape index: {}]   ;;  %s1072_s1 = inlined_call_operand.hbm [shape: f32[384,384], index: 1, kind: input, shape index: {}]   ;;  %s1073_s2 = inlined_call_operand.vmem [shape: f32[1,384], index: 2, kind: input, shape index: {}]   ;;  %s1074_s3 = inlined_call_operand.hbm [shape: f32[2,8], index: 3, kind: output, shape index: {}]  }
   0x1   :  { %9 = vsyncpa [#allocation6], 0 }
   0x2   :  { %10 = vsyncpa [#allocation4], 0  ;;  %s957_s12 = smov [#allocation2]   ;;  %s885_s16 = scalar_lea.hbm %s1071_s0, 768 }
   0x3   :  { %s16_s13 = sshll.u32 %s957_s12, 4  ;;  %p886_p0 = scmp.ne.s32.totalorder %s1071_s0, %s885_s16  ;;  %s17_s13 = int_to_ptr.vmem [resolvable:$true] %s16_s13 }
   0x4   :  { %p889_p1 = scmp.lt.u32.totalorder %s885_s16, %s1071_s0 }
   0x6   :  { %p891_p2 = pnand %p889_p1, %p886_p0 }
   0x8   :  { %894 = shalt.err (!%p891_p2)
}
   0x9   :  { %s895_s21 = scalar_lea.vmem %s17_s13, 768  ;;  %p900_p4 = scmp.lt.s32.totalorder %s17_s13, %s17_s13 }
   0xa   :  { %p896_p3 = scmp.ne.s32.totalorder %s17_s13, %s895_s21  ;;  %p901_p5 = scmp.lt.s32.totalorder %s895_s21, %s895_s21 }
   0xc   :  { %p902_p6 = por %p901_p5, %p900_p4 }
   0xe   :  { %p903_p7 = pnand %p902_p6, %p896_p3 }
  0x10   :  { %906 = shalt.err (!%p903_p7)
}
  0x11   :  { %s958_s22 = smov 384   ;;  %s959_s23 = smov 24  }
  0x12   :  { %22 = dma.hbm_to_vmem [thread:$0]  %s1071_s0, 768, %s17_s13, [#allocation3], %s958_s22, %s958_s22, %s959_s23  }
  0x13   :  { %s960_s26 = smov [#allocation5]   ;;  %s907_s30 = scalar_lea.hbm %s1072_s1, 18432 }
  0x14   :  { %s28_s27 = sshll.u32 %s960_s26, 4  ;;  %p908_p8 = scmp.ne.s32.totalorder %s1072_s1, %s907_s30  ;;  %s29_s27 = int_to_ptr.vmem [resolvable:$true] %s28_s27 }
  0x15   :  { %p911_p9 = scmp.lt.u32.totalorder %s907_s30, %s1072_s1 }
  0x17   :  { %p913_p10 = pnand %p911_p9, %p908_p8 }
  0x19   :  { %916 = shalt.err (!%p913_p10)
}
  0x1a   :  { %s917_s8 = scalar_lea.vmem %s29_s27, 18432  ;;  %p922_p12 = scmp.lt.s32.totalorder %s29_s27, %s29_s27 }
  0x1b   :  { %p918_p11 = scmp.ne.s32.totalorder %s29_s27, %s917_s8  ;;  %p923_p13 = scmp.lt.s32.totalorder %s917_s8, %s917_s8 }
  0x1d   :  { %p924_p0 = por %p923_p13, %p922_p12 }
  0x1f   :  { %p925_p1 = pnand %p924_p0, %p918_p11 }
  0x21   :  { %928 = shalt.err (!%p925_p1)
}
  0x22   :  { %34 = dma.hbm_to_vmem [thread:$0]  %s1072_s1, 18432, %s29_s27, [#allocation6], %s958_s22, %s958_s22, %s959_s23  }
  0x23   :  { %951 = dma.done.wait [#allocation3], 768  }
  0x24   :  { %952 = vsyncadd [#allocation3], 4294966528 }
  0x25   :  { %953 = dma.done.wait [#allocation6], 18432  }
  0x26   :  { %954 = vsyncadd [#allocation6], 4294948864  ;;  %v45_v0 = vld [vmem:[#allocation5 + $0x8] sm:$0xff]  ;;  %v48_v1 = vld [vmem:[#allocation5 + $0x20] sm:$0xff]  ;;  %v189_v50 = vlaneseq  ;;  %vm962_vm0 = vmmov 0   ;;  %vm530_vm1 = vcmask 1041409  }
  0x27   :  { %v44_v2 = vld [vmem:[#allocation5] sm:$0xff]  ;;  %v712_v3 = vpack.c.bf16 %v48_v1, %v45_v0  ;;  %v47_v4 = vld [vmem:[#allocation5 + $0x18] sm:$0xff]  ;;  %v54_v6 = vld [vmem:[#allocation5 + $0x50] sm:$0xff]  ;;  %vm533_vm2 = vcmask 58368  }
  0x28   :  { %v51_v5 = vld [vmem:[#allocation5 + $0x38] sm:$0xff]  ;;  %v714_v7 = vpack.c.bf16 %v47_v4, %v44_v2  ;;  %v94_v9 = vld [vmem:[#allocation5 + $0x190] sm:$0xff]  ;;  %v97_v10 = vld [vmem:[#allocation5 + $0x1a8] sm:$0xff]  ;;  %v1011_v0 = vshrl.u32 %v189_v50, 7 }
  0x29   :  { %v716_v8 = vpack.c.bf16 %v54_v6, %v51_v5  ;;  %v50_v11 = vld [vmem:[#allocation5 + $0x30] sm:$0xff]  ;;  %713 = vmatprep.subr.bf16.mxu0 %v712_v3  ;;  %v808_v12 = vpack.c.bf16 %v97_v10, %v94_v9  ;;  %v53_v13 = vld [vmem:[#allocation5 + $0x48] sm:$0xff]  ;;  %v60_v19 = vld [vmem:[#allocation5 + $0x80] sm:$0xff] }
  0x2a   :  { %v46_v14 = vld [vmem:[#allocation5 + $0x10] sm:$0xff]  ;;  %v49_v15 = vld [vmem:[#allocation5 + $0x28] sm:$0xff]  ;;  %715 = vmatpush1.bf16.msra.mxu0 %v714_v7  ;;  %v718_v16 = vpack.c.bf16 %v53_v13, %v50_v11  ;;  %v100_v20 = vld [vmem:[#allocation5 + $0x1c0] sm:$0xff]  ;;  %v1014_v13 = vsub.s32 1, %v1011_v0 }
  0x2b   :  { %v810_v17 = vpack.c.bf16 %v49_v15, %v46_v14  ;;  %v57_v18 = vld [vmem:[#allocation5 + $0x68] sm:$0xff]  ;;  %717 = vmatprep.subr.bf16.mxu0 %v716_v8  ;;  %809 = vmatprep.subr.bf16.mxu1 %v808_v12  ;;  %v103_v22 = vld [vmem:[#allocation5 + $0x1d8] sm:$0xff]  ;;  %v56_v23 = vld [vmem:[#allocation5 + $0x60] sm:$0xff] }
  0x2c   :  { %v720_v21 = vpack.c.bf16 %v60_v19, %v57_v18  ;;  %v59_v24 = vld [vmem:[#allocation5 + $0x78] sm:$0xff]  ;;  %v812_v25 = vpack.c.bf16 %v103_v22, %v100_v20  ;;  %v52_v26 = vld [vmem:[#allocation5 + $0x40] sm:$0xff]  ;;  %v66_v30 = vld [vmem:[#allocation5 + $0xb0] sm:$0xff] }
  0x2d   :  { %811 = vmatpush3.bf16.msra.mxu1 %v810_v17  ;;  %v55_v27 = vld [vmem:[#allocation5 + $0x58] sm:$0xff]  ;;  %v106_v31 = vld [vmem:[#allocation5 + $0x1f0] sm:$0xff]  ;;  %v109_v32 = vld [vmem:[#allocation5 + $0x208] sm:$0xff]  ;;  %v722_v33 = vpack.c.bf16 %v59_v24, %v56_v23 }
  0x2e   :  { %v63_v28 = vld [vmem:[#allocation5 + $0x98] sm:$0xff]  ;;  %v814_v29 = vpack.c.bf16 %v55_v27, %v52_v26  ;;  %719 = vmatpush1.bf16.msra.mxu0 %v718_v16  ;;  %813 = vmatprep.subr.bf16.mxu1 %v812_v25  ;;  %v816_v34 = vpack.c.bf16 %v109_v32, %v106_v31  ;;  %v62_v35 = vld [vmem:[#allocation5 + $0x90] sm:$0xff]  ;;  %v65_v38 = vld [vmem:[#allocation5 + $0xa8] sm:$0xff] }
  0x2f   :  { %v58_v36 = vld [vmem:[#allocation5 + $0x70] sm:$0xff]  ;;  %721 = vmatprep.subr.bf16.mxu0 %v720_v21  ;;  %v724_v37 = vpack.c.bf16 %v66_v30, %v63_v28  ;;  %v61_v39 = vld [vmem:[#allocation5 + $0x88] sm:$0xff]  ;;  %v72_v42 = vld [vmem:[#allocation5 + $0xe0] sm:$0xff]  ;;  %v726_v48 = vpack.c.bf16 %v65_v38, %v62_v35 }
  0x30   :  { %v69_v40 = vld [vmem:[#allocation5 + $0xc8] sm:$0xff]  ;;  %v818_v41 = vpack.c.bf16 %v61_v39, %v58_v36  ;;  %v112_v43 = vld [vmem:[#allocation5 + $0x220] sm:$0xff]  ;;  %v115_v44 = vld [vmem:[#allocation5 + $0x238] sm:$0xff] }
  0x31   :  { %815 = vmatpush3.bf16.msra.mxu1 %v814_v29  ;;  %v820_v45 = vpack.c.bf16 %v115_v44, %v112_v43  ;;  %v64_v46 = vld [vmem:[#allocation5 + $0xa0] sm:$0xff]  ;;  %v67_v47 = vld [vmem:[#allocation5 + $0xb8] sm:$0xff]  ;;  %v118_v49 = vld [vmem:[#allocation5 + $0x250] sm:$0xff]  ;;  %v728_v51 = vpack.c.bf16 %v72_v42, %v69_v40 }
  0x32   :  { %817 = vmatprep.subr.bf16.mxu1 %v816_v34  ;;  %723 = vmatpush1.bf16.msra.mxu0 %v722_v33  ;;  %v68_v52 = vld [vmem:[#allocation5 + $0xc0] sm:$0xff]  ;;  %v71_v53 = vld [vmem:[#allocation5 + $0xd8] sm:$0xff]  ;;  %v121_v54 = vld [vmem:[#allocation5 + $0x268] sm:$0xff]  ;;  %v822_v55 = vpack.c.bf16 %v67_v47, %v64_v46 }
  0x33   :  { %725 = vmatprep.subr.bf16.mxu0 %v724_v37  ;;  %v75_v56 = vld [vmem:[#allocation5 + $0xf8] sm:$0xff]  ;;  %v78_v57 = vld [vmem:[#allocation5 + $0x110] sm:$0xff]  ;;  %v824_v58 = vpack.c.bf16 %v121_v54, %v118_v49  ;;  %v73_v60 = vld [vmem:[#allocation5 + $0xe8] sm:$0xff]  ;;  %v730_v61 = vpack.c.bf16 %v71_v53, %v68_v52 }
  0x34   :  { %v70_v59 = vld [vmem:[#allocation5 + $0xd0] sm:$0xff]  ;;  %v124_v62 = vld [vmem:[#allocation5 + $0x280] sm:$0xff]  ;;  %v127_v63 = vld [vmem:[#allocation5 + $0x298] sm:$0xff]  ;;  %v732_v1 = vpack.c.bf16 %v78_v57, %v75_v56  ;;  %v961_v56 = vmov 0.0|0.0  }
  0x35   :  { %819 = vmatpush3.bf16.msra.mxu1 %v818_v41  ;;  %v74_v2 = vld [vmem:[#allocation5 + $0xf0] sm:$0xff]  ;;  %v77_v3 = vld [vmem:[#allocation5 + $0x108] sm:$0xff]  ;;  %v826_v4 = vpack.c.bf16 %v73_v60, %v70_v59  ;;  %v84_v6 = vld [vmem:[#allocation5 + $0x140] sm:$0xff]  ;;  %v828_v7 = vpack.c.bf16 %v127_v63, %v124_v62  ;;  %v1024_v41 = vsub.s32 0, %v1011_v0 }
  0x36   :  { %821 = vmatprep.subr.bf16.mxu1 %v820_v45  ;;  %727 = vmatpush1.bf16.msra.mxu0 %v726_v48  ;;  %v81_v5 = vld [vmem:[#allocation5 + $0x128] sm:$0xff]  ;;  %v76_v8 = vld [vmem:[#allocation5 + $0x100] sm:$0xff]  ;;  %v79_v9 = vld [vmem:[#allocation5 + $0x118] sm:$0xff]  ;;  %v734_v10 = vpack.c.bf16 %v77_v3, %v74_v2  ;;  %v963_v3 = vmov 0.0  }
  0x37   :  { %729 = vmatprep.subr.bf16.mxu0 %v728_v51  ;;  %v130_v11 = vld [vmem:[#allocation5 + $0x2b0] sm:$0xff]  ;;  %v133_v12 = vld [vmem:[#allocation5 + $0x2c8] sm:$0xff]  ;;  %v736_v14 = vpack.c.bf16 %v84_v6, %v81_v5  ;;  %v80_v15 = vld [vmem:[#allocation5 + $0x120] sm:$0xff]  ;;  %v830_v17 = vpack.c.bf16 %v79_v9, %v76_v8 }
  0x38   :  { %v83_v16 = vld [vmem:[#allocation5 + $0x138] sm:$0xff]  ;;  %v90_v19 = vld [vmem:[#allocation5 + $0x170] sm:$0xff]  ;;  %v832_v20 = vpack.c.bf16 %v133_v12, %v130_v11  ;;  %v85_v22 = vld [vmem:[#allocation5 + $0x148] sm:$0xff] }
  0x39   :  { %823 = vmatpush3.bf16.msra.mxu1 %v822_v55  ;;  %v87_v18 = vld [vmem:[#allocation5 + $0x158] sm:$0xff]  ;;  %v82_v21 = vld [vmem:[#allocation5 + $0x130] sm:$0xff]  ;;  %v738_v24 = vpack.c.bf16 %v83_v16, %v80_v15  ;;  %v136_v25 = vld [vmem:[#allocation5 + $0x2e0] sm:$0xff] }
  0x3a   :  { %825 = vmatprep.subr.bf16.mxu1 %v824_v58  ;;  %731 = vmatpush1.bf16.msra.mxu0 %v730_v61  ;;  %v1019_v23 = vld [vmem:[%s1073_s2] sm:$0x7]  ;;  %v139_v26 = vld [vmem:[#allocation5 + $0x2f8] sm:$0xff]  ;;  %v740_v28 = vpack.c.bf16 %v90_v19, %v87_v18  ;;  %v89_v30 = vld [vmem:[#allocation5 + $0x168] sm:$0xff]  ;;  %v834_v31 = vpack.c.bf16 %v85_v22, %v82_v21  ;;  %s965_s2 = smov [#allocation7]  }
  0x3b   :  { %733 = vmatprep.subr.bf16.mxu0 %v732_v1  ;;  %v196_v27 = vrot.slane %v1019_v23, %v1014_v13  ;;  %v86_v29 = vld [vmem:[#allocation5 + $0x150] sm:$0xff]  ;;  %v93_v32 = vld [vmem:[#allocation5 + $0x188] sm:$0xff]  ;;  %v96_v33 = vld [vmem:[#allocation5 + $0x1a0] sm:$0xff]  ;;  %v836_v34 = vpack.c.bf16 %v139_v26, %v136_v25  ;;  %v1028_v52 = vrot.slane %v1019_v23, %v1024_v41  ;;  %s615_s11 = sshll.u32 %s965_s2, 4  ;;  %s616_s11 = int_to_ptr.vmem [resolvable:$true] %s615_s11 }
  0x3c   :  { %v88_v35 = vld [vmem:[#allocation5 + $0x160] sm:$0xff]  ;;  %v91_v36 = vld [vmem:[#allocation5 + $0x178] sm:$0xff]  ;;  %v742_v37 = vpack.c.bf16 %v89_v30, %v86_v29  ;;  %v744_v38 = vpack.c.bf16 %v96_v33, %v93_v32  ;;  %v102_v44 = vld [vmem:[#allocation5 + $0x1d0] sm:$0xff]  ;;  %s929_s12 = scalar_lea.vmem %s616_s11, 32  ;;  %p934_p3 = scmp.lt.s32.totalorder %s616_s11, %s616_s11 }
  0x3d   :  { %827 = vmatpush3.bf16.msra.mxu1 %v826_v4  ;;  %410 = vmatprep.mubr.f32.mxu1 %v196_v27  ;;  %v92_v39 = vld [vmem:[#allocation5 + $0x180] sm:$0xff]  ;;  %v95_v40 = vld [vmem:[#allocation5 + $0x198] sm:$0xff]  ;;  %v838_v42 = vpack.c.bf16 %v91_v36, %v88_v35  ;;  %v142_v45 = vld [vmem:[#allocation5 + $0x310] sm:$0xff]  ;;  %p930_p2 = scmp.ne.s32.totalorder %s616_s11, %s929_s12  ;;  %p935_p4 = scmp.lt.s32.totalorder %s929_s12, %s929_s12 }
  0x3e   :  { %829 = vmatprep.subr.bf16.mxu1 %v828_v7  ;;  %735 = vmatpush1.bf16.msra.mxu0 %v734_v10  ;;  %v99_v43 = vld [vmem:[#allocation5 + $0x1b8] sm:$0xff]  ;;  %v145_v46 = vld [vmem:[#allocation5 + $0x328] sm:$0xff]  ;;  %v746_v47 = vpack.c.bf16 %v95_v40, %v92_v39  ;;  %v98_v49 = vld [vmem:[#allocation5 + $0x1b0] sm:$0xff] }
  0x3f   :  { %737 = vmatprep.subr.bf16.mxu0 %v736_v14  ;;  %268 = vmatprep.mubr.f32.mxu0 %v196_v27  ;;  %v748_v48 = vpack.c.bf16 %v102_v44, %v99_v43  ;;  %v101_v51 = vld [vmem:[#allocation5 + $0x1c8] sm:$0xff]  ;;  %v841_v53 = vpack.c.bf16 %v145_v46, %v142_v45  ;;  %v108_v55 = vld [vmem:[#allocation5 + $0x200] sm:$0xff]  ;;  %v151_v58 = vld [vmem:[#allocation5 + $0x358] sm:$0xff]  ;;  %p936_p5 = por %p935_p4, %p934_p3 }
  0x40   :  { %v105_v54 = vld [vmem:[#allocation5 + $0x1e8] sm:$0xff]  ;;  %v148_v57 = vld [vmem:[#allocation5 + $0x340] sm:$0xff]  ;;  %v750_v59 = vpack.c.bf16 %v101_v51, %v98_v49  ;;  %v107_v62 = vld [vmem:[#allocation5 + $0x1f8] sm:$0xff] }
  0x41   :  { %831 = vmatpush3.bf16.msra.mxu1 %v830_v17  ;;  %v752_v60 = vpack.c.bf16 %v108_v55, %v105_v54  ;;  %v104_v61 = vld [vmem:[#allocation5 + $0x1e0] sm:$0xff]  ;;  %v844_v63 = vpack.c.bf16 %v151_v58, %v148_v57  ;;  %v111_v1 = vld [vmem:[#allocation5 + $0x218] sm:$0xff]  ;;  %v114_v2 = vld [vmem:[#allocation5 + $0x230] sm:$0xff]  ;;  %v199_v58 = vsub.s32 2, %v1011_v0  ;;  %p937_p6 = pnand %p936_p5, %p930_p2 }
  0x42   :  { %833 = vmatprep.subr.bf16.mxu1 %v832_v20  ;;  %739 = vmatpush1.bf16.msra.mxu0 %v738_v24  ;;  %v154_v4 = vld [vmem:[#allocation5 + $0x370] sm:$0xff]  ;;  %v157_v5 = vld [vmem:[#allocation5 + $0x388] sm:$0xff]  ;;  %v754_v6 = vpack.c.bf16 %v107_v62, %v104_v61  ;;  %v756_v7 = vpack.c.bf16 %v114_v2, %v111_v1  ;;  %v120_v12 = vld [vmem:[#allocation5 + $0x260] sm:$0xff] }
  0x43   :  { %741 = vmatprep.subr.bf16.mxu0 %v740_v28  ;;  %v110_v8 = vld [vmem:[#allocation5 + $0x210] sm:$0xff]  ;;  %v113_v9 = vld [vmem:[#allocation5 + $0x228] sm:$0xff]  ;;  %v847_v10 = vpack.c.bf16 %v157_v5, %v154_v4  ;;  %v160_v14 = vld [vmem:[#allocation5 + $0x3a0] sm:$0xff]  ;;  %v200_v4 = vrot.slane %v1019_v23, %v199_v58 }
  0x44   :  { %v117_v11 = vld [vmem:[#allocation5 + $0x248] sm:$0xff]  ;;  %v163_v15 = vld [vmem:[#allocation5 + $0x3b8] sm:$0xff]  ;;  %v758_v16 = vpack.c.bf16 %v113_v9, %v110_v8  ;;  %v116_v18 = vld [vmem:[#allocation5 + $0x240] sm:$0xff] }
  0x45   :  { %835 = vmatpush3.bf16.msra.mxu1 %v834_v31  ;;  %v760_v17 = vpack.c.bf16 %v120_v12, %v117_v11  ;;  %v119_v19 = vld [vmem:[#allocation5 + $0x258] sm:$0xff]  ;;  %v850_v20 = vpack.c.bf16 %v163_v15, %v160_v14  ;;  %v126_v22 = vld [vmem:[#allocation5 + $0x290] sm:$0xff]  ;;  %v169_v25 = vld [vmem:[#allocation5 + $0x3e8] sm:$0xff] }
  0x46   :  { %837 = vmatprep.subr.bf16.mxu1 %v836_v34  ;;  %743 = vmatpush1.bf16.msra.mxu0 %v742_v37  ;;  %v123_v21 = vld [vmem:[#allocation5 + $0x278] sm:$0xff]  ;;  %v166_v24 = vld [vmem:[#allocation5 + $0x3d0] sm:$0xff]  ;;  %v762_v26 = vpack.c.bf16 %v119_v19, %v116_v18  ;;  %v125_v29 = vld [vmem:[#allocation5 + $0x288] sm:$0xff] }
  0x47   :  { %745 = vmatprep.subr.bf16.mxu0 %v744_v38  ;;  %v764_v27 = vpack.c.bf16 %v126_v22, %v123_v21  ;;  %v122_v28 = vld [vmem:[#allocation5 + $0x270] sm:$0xff]  ;;  %v853_v30 = vpack.c.bf16 %v169_v25, %v166_v24  ;;  %v129_v31 = vld [vmem:[#allocation5 + $0x2a8] sm:$0xff]  ;;  %v132_v32 = vld [vmem:[#allocation5 + $0x2c0] sm:$0xff] }
  0x48   :  { %v172_v33 = vld [vmem:[#allocation5 + $0x400] sm:$0xff]  ;;  %v175_v34 = vld [vmem:[#allocation5 + $0x418] sm:$0xff]  ;;  %v766_v35 = vpack.c.bf16 %v125_v29, %v122_v28  ;;  %v768_v36 = vpack.c.bf16 %v132_v32, %v129_v31  ;;  %v178_v43 = vld [vmem:[#allocation5 + $0x430] sm:$0xff] }
  0x49   :  { %839 = vmatpush3.bf16.msra.mxu1 %v838_v42  ;;  %v128_v37 = vld [vmem:[#allocation5 + $0x2a0] sm:$0xff]  ;;  %v131_v38 = vld [vmem:[#allocation5 + $0x2b8] sm:$0xff]  ;;  %v856_v39 = vpack.c.bf16 %v175_v34, %v172_v33  ;;  %v138_v42 = vld [vmem:[#allocation5 + $0x2f0] sm:$0xff] }
  0x4a   :  { %840 = vmatprep.subr.bf16.mxu1 %v961_v56  ;;  %747 = vmatpush1.bf16.msra.mxu0 %v746_v47  ;;  %v135_v40 = vld [vmem:[#allocation5 + $0x2d8] sm:$0xff]  ;;  %v181_v44 = vld [vmem:[#allocation5 + $0x448] sm:$0xff]  ;;  %v770_v45 = vpack.c.bf16 %v131_v38, %v128_v37  ;;  %v134_v47 = vld [vmem:[#allocation5 + $0x2d0] sm:$0xff] }
  0x4b   :  { %749 = vmatprep.subr.bf16.mxu0 %v748_v48  ;;  %v772_v46 = vpack.c.bf16 %v138_v42, %v135_v40  ;;  %v137_v48 = vld [vmem:[#allocation5 + $0x2e8] sm:$0xff]  ;;  %v859_v49 = vpack.c.bf16 %v181_v44, %v178_v43  ;;  %v184_v54 = vld [vmem:[#allocation5 + $0x460] sm:$0xff]  ;;  %v187_v55 = vld [vmem:[#allocation5 + $0x478] sm:$0xff] }
  0x4c   :  { %411 = vmatmul.mubr.f32.vlgmr.msra.gmra.mrb[0].mxu1 %v1028_v52  ;;  %v141_v51 = vld [vmem:[#allocation5 + $0x308] sm:$0xff]  ;;  %v774_v57 = vpack.c.bf16 %v137_v48, %v134_v47  ;;  %v143_v61 = vld [vmem:[#allocation5 + $0x318] sm:$0xff]  ;;  %v862_v62 = vpack.c.bf16 %v187_v55, %v184_v54  ;;  %v150_v1 = vld [vmem:[#allocation5 + $0x350] sm:$0xff] }
  0x4d   :  { %842 = vmatpush3.bf16.msra.mxu1 %v841_v53  ;;  %709 = vmatprep.mubr.msk.f32.mxu1 %vm962_vm0, %v963_v3  ;;  %v144_v53 = vld [vmem:[#allocation5 + $0x320] sm:$0xff]  ;;  %v153_v8 = vld [vmem:[#allocation5 + $0x368] sm:$0xff]  ;;  %v155_v12 = vld [vmem:[#allocation5 + $0x378] sm:$0xff] }
  0x4e   :  { %843 = vmatprep.subr.bf16.mxu1 %v961_v56  ;;  %751 = vmatpush1.bf16.msra.mxu0 %v750_v59  ;;  %v776_v59 = vpack.c.bf16 %v144_v53, %v141_v51  ;;  %v156_v9 = vld [vmem:[#allocation5 + $0x380] sm:$0xff]  ;;  %v159_v14 = vld [vmem:[#allocation5 + $0x398] sm:$0xff]  ;;  %v162_v23 = vld [vmem:[#allocation5 + $0x3b0] sm:$0xff] }
  0x4f   :  { %753 = vmatprep.subr.bf16.mxu0 %v752_v60  ;;  %v140_v60 = vld [vmem:[#allocation5 + $0x300] sm:$0xff]  ;;  %v161_v18 = vld [vmem:[#allocation5 + $0x3a8] sm:$0xff]  ;;  %v167_v22 = vld [vmem:[#allocation5 + $0x3d8] sm:$0xff] }
  0x50   :  { %v778_v2 = vpack.c.bf16 %v143_v61, %v140_v60  ;;  %v152_v11 = vld [vmem:[#allocation5 + $0x360] sm:$0xff]  ;;  %v165_v19 = vld [vmem:[#allocation5 + $0x3c8] sm:$0xff]  ;;  %v171_v24 = vld [vmem:[#allocation5 + $0x3f8] sm:$0xff] }
  0x51   :  { %845 = vmatpush3.bf16.msra.mxu1 %v844_v63  ;;  %v147_v63 = vld [vmem:[#allocation5 + $0x338] sm:$0xff]  ;;  %v786_v15 = vpack.c.bf16 %v155_v12, %v152_v11  ;;  %v174_v25 = vld [vmem:[#allocation5 + $0x410] sm:$0xff]  ;;  %v173_v29 = vld [vmem:[#allocation5 + $0x408] sm:$0xff]  ;;  %v521_v11 = vand.u32 127, %v189_v50 }
  0x52   :  { %846 = vmatprep.subr.bf16.mxu1 %v961_v56  ;;  %755 = vmatpush1.bf16.msra.mxu0 %v754_v6  ;;  %v780_v5 = vpack.c.bf16 %v150_v1, %v147_v63  ;;  %v146_v6 = vld [vmem:[#allocation5 + $0x330] sm:$0xff]  ;;  %v180_v31 = vld [vmem:[#allocation5 + $0x440] sm:$0xff]  ;;  %v185_v42 = vld [vmem:[#allocation5 + $0x468] sm:$0xff] }
  0x53   :  { %757 = vmatprep.subr.bf16.mxu0 %v756_v7  ;;  %v149_v7 = vld [vmem:[#allocation5 + $0x348] sm:$0xff]  ;;  %v170_v28 = vld [vmem:[#allocation5 + $0x3f0] sm:$0xff]  ;;  %v176_v34 = vld [vmem:[#allocation5 + $0x420] sm:$0xff] }
  0x54   :  { %v798_v32 = vpack.c.bf16 %v173_v29, %v170_v28  ;;  %v186_v37 = vld [vmem:[#allocation5 + $0x470] sm:$0xff]  ;;  %v489_v54 = vld [vmem:[#allocation2 + $0x18] sm:$0xff]  ;;  %v487_v58 = vld [vmem:[#allocation2 + $0x8] sm:$0xff] }
  0x55   :  { %848 = vmatpush3.bf16.msra.mxu1 %v847_v10  ;;  %v782_v10 = vpack.c.bf16 %v149_v7, %v146_v6  ;;  %v182_v40 = vld [vmem:[#allocation5 + $0x450] sm:$0xff]  ;;  %v488_v1 = vld [vmem:[#allocation2 + $0x10] sm:$0xff] }
  0x56   :  { %849 = vmatprep.subr.bf16.mxu1 %v961_v56  ;;  %759 = vmatpush1.bf16.msra.mxu0 %v758_v16  ;;  %v788_v16 = vpack.c.bf16 %v162_v23, %v159_v14  ;;  %v806_v43 = vpack.c.bf16 %v185_v42, %v182_v40  ;;  %v486_v53 = vld [vmem:[#allocation2] sm:$0xff]  ;;  %v524_v14 = vsub.s32 %v521_v11, %v1011_v0 }
  0x57   :  { %761 = vmatprep.subr.bf16.mxu0 %v760_v17  ;;  %v158_v17 = vld [vmem:[#allocation5 + $0x390] sm:$0xff] }
  0x59   :  { %851 = vmatpush3.bf16.msra.mxu1 %v850_v20  ;;  %v168_v20 = vld [vmem:[#allocation5 + $0x3e0] sm:$0xff] }
  0x5a   :  { %852 = vmatprep.subr.bf16.mxu1 %v961_v56  ;;  %763 = vmatpush1.bf16.msra.mxu0 %v762_v26  ;;  %v792_v21 = vpack.c.bf16 %v168_v20, %v165_v19  ;;  %v964_v19 = vmov 0  }
  0x5b   :  { %765 = vmatprep.subr.bf16.mxu0 %v764_v27  ;;  %v796_v27 = vpack.c.bf16 %v174_v25, %v171_v24  ;;  %876 = vset.pattern.permute.xlu0 %v964_v19 }
  0x5c   :  { %875 = vset.pattern.permute.xlu1 %v964_v19 }
  0x5d   :  { %854 = vmatpush3.bf16.msra.mxu1 %v853_v30  ;;  %v177_v30 = vld [vmem:[#allocation5 + $0x428] sm:$0xff] }
  0x5e   :  { %855 = vmatprep.subr.bf16.mxu1 %v961_v56  ;;  %767 = vmatpush1.bf16.msra.mxu0 %v766_v35  ;;  %v800_v33 = vpack.c.bf16 %v180_v31, %v177_v30  ;;  %v179_v35 = vld [vmem:[#allocation5 + $0x438] sm:$0xff] }
  0x5f   :  { %769 = vmatprep.subr.bf16.mxu0 %v768_v36  ;;  %v183_v36 = vld [vmem:[#allocation5 + $0x458] sm:$0xff]  ;;  %v802_v38 = vpack.c.bf16 %v179_v35, %v176_v34 }
  0x61   :  { %857 = vmatpush3.bf16.msra.mxu1 %v856_v39  ;;  %v804_v39 = vpack.c.bf16 %v186_v37, %v183_v36 }
  0x62   :  { %858 = vmatprep.subr.bf16.mxu1 %v961_v56  ;;  %771 = vmatpush1.bf16.msra.mxu0 %v770_v45 }
  0x63   :  { %773 = vmatprep.subr.bf16.mxu0 %v772_v46 }
  0x65   :  { %860 = vmatpush3.bf16.msra.mxu1 %v859_v49 }
  0x66   :  { %861 = vmatprep.subr.bf16.mxu1 %v961_v56  ;;  %775 = vmatpush1.bf16.msra.mxu0 %v774_v57  ;;  %v784_v56 = vpack.c.bf16 %v156_v9, %v153_v8 }
  0x67   :  { %777 = vmatprep.subr.bf16.mxu0 %v776_v59  ;;  %v490_v59 = vld [vmem:[#allocation2 + $0x20] sm:$0xff] }
  0x69   :  { %863 = vmatpush3.bf16.msra.mxu1 %v862_v62  ;;  %269 = vmatmul.mubr.f32.vlgmr.msra.gmra.mrb[0].mxu0 %v1028_v52  ;;  %v790_v52 = vpack.c.bf16 %v161_v18, %v158_v17 }
  0x6a   :  { %779 = vmatpush1.bf16.msra.mxu0 %v778_v2  ;;  %339 = vmatprep.mubr.f32.mxu0 %v963_v3  ;;  %v164_v3 = vld [vmem:[#allocation5 + $0x3c0] sm:$0xff]  ;;  %v491_v2 = vld [vmem:[#allocation2 + $0x28] sm:$0xff] }
  0x6b   :  { %781 = vmatprep.subr.bf16.mxu0 %v780_v5  ;;  %v794_v26 = vpack.c.bf16 %v167_v22, %v164_v3 }
  0x6c   :  { %710 = vmatmul.mubr.f32.vlgmr.msra.gmra.mrb[2].mxu1 %v200_v4 }
  0x6e   :  { %783 = vmatpush1.bf16.msra.mxu0 %v782_v10 }
  0x6f   :  { %785 = vmatprep.subr.bf16.mxu0 %v784_v56 }
  0x72   :  { %787 = vmatpush1.bf16.msra.mxu0 %v786_v15 }
  0x73   :  { %789 = vmatprep.subr.bf16.mxu0 %v788_v16 }
  0x76   :  { %791 = vmatpush1.bf16.msra.mxu0 %v790_v52 }
  0x77   :  { %793 = vmatprep.subr.bf16.mxu0 %v792_v21 }
  0x7a   :  { %795 = vmatpush1.bf16.msra.mxu0 %v794_v26 }
  0x7b   :  { %797 = vmatprep.subr.bf16.mxu0 %v796_v27 }
  0x7e   :  { %799 = vmatpush1.bf16.msra.mxu0 %v798_v32 }
  0x7f   :  { %801 = vmatprep.subr.bf16.mxu0 %v800_v33 }
  0x82   :  { %803 = vmatpush1.bf16.msra.mxu0 %v802_v38 }
  0x83   :  { %805 = vmatprep.subr.bf16.mxu0 %v804_v39 }
  0x86   :  { %807 = vmatpush1.bf16.msra.mxu0 %v806_v43 }
  0x89   :  { %340 = vmatmul.mubr.f32.vlgmr.msra.gmra.mrb[0].mxu0 %v200_v4 }
 0x11f   :  { %v657_v44 = vpop.f32.mrb[0].mxu1 }
 0x120   :  { %v658_v45 = vpop.f32.mrb[1].mxu1 }
 0x121   :  { %v659_v46 = vadd.f32 %v658_v45, %v657_v44 }
 0x13f   :  { %v482_v47 = vpop.f32.mrb[2].mxu1 }
 0x140   :  { %v483_v48 = vadd.f32 %v659_v46, %v482_v47  ;;  %v711_v49 = vpop.f32.mrb[3].mxu1 }
 0x142   :  { %v503_v60 = vrot.slane %v483_v48, %v1024_v41 }
 0x144   :  { %v506_v6 = vmul.f32 %v503_v60, %v488_v1  ;;  %v509_v8 = vmul.f32 %v503_v60, %v491_v2 }
 0x15c   :  { %v341_v51 = vpop.f32.mrb[0].mxu0 }
 0x15d   :  { %v495_v55 = vrot.slane %v341_v51, %v1024_v41  ;;  %v343_v57 = vpop.f32.mrb[1].mxu0 }
 0x15e   :  { %v499_v61 = vrot.slane %v343_v57, %v1024_v41 }
 0x15f   :  { %v504_v62 = vmul.f32 %v495_v55, %v486_v53  ;;  %v507_v63 = vmul.f32 %v495_v55, %v489_v54 }
 0x160   :  { %v505_v4 = vmul.f32 %v499_v61, %v487_v58  ;;  %v508_v5 = vmul.f32 %v499_v61, %v490_v59 }
 0x162   :  { %v510_v7 = vadd.f32 %v505_v4, %v504_v62  ;;  %v514_v9 = vadd.f32 %v508_v5, %v507_v63 }
 0x164   :  { %v511_v10 = vadd.f32 %v510_v7, %v506_v6  ;;  %v515_v56 = vadd.f32 %v514_v9, %v509_v8 }
 0x166   :  { %512 = vadd.xlane.f32.xlu0 %v511_v10 }
 0x16a   :  { %516 = vadd.xlane.f32.xlu0 %v515_v56 }
 0x1f3   :  { %v513_v12 = vpop.xlane.xlu0 %512 }
 0x1f4   :  { %v525_v15 = vrot.slane %v513_v12, %v524_v14 }
 0x1f7   :  { %v517_v23 = vpop.xlane.xlu0 %516 }
 0x1f8   :  { %v529_v16 = vrot.slane %v517_v23, %v524_v14 }
 0x1fa   :  { %v531_v17 = vsel %vm530_vm1, %v529_v16, %v525_v15 }
 0x1fb   :  { %v534_v18 = vsel %vm533_vm2, %v531_v17, -inf }
 0x1fc   :  { %535 = vmax.xlane.f32.xlu1 %v534_v18 }
 0x289   :  { %v536_v20 = vpop.xlane.xlu1 %535 }
 0x28a   :  { %v541_v52 = vrot.slane %v536_v20, %v1024_v41  ;;  %v545_v50 = vrot.slane %v536_v20, %v1014_v13 }
 0x28c   :  { %v548_v21 = vsub.f32 %v513_v12, %v541_v52  ;;  %v549_v0 = vsub.f32 %v517_v23, %v545_v50 }
 0x28e   :  { %v550_v3 = vmul.f32 1.442695, %v548_v21  ;;  %v552_v22 = vmul.f32 1.442695, %v549_v0 }
 0x290   :  { %877 = vpow2.f32 %v550_v3 }
 0x291   :  { %879 = vpow2.f32 %v552_v22 }
 0x29a   :  { %v878_v24 = vpop.eup %877 }
 0x29b   :  { %v880_v25 = vpop.eup %879  ;;  %557 = vperm.xlu1 %875, %v878_v24  }
 0x29c   :  { %560 = vperm.xlu0 %876, %v880_v25  }
 0x31a   :  { %v558_v26 = vpop.permute.xlu1 %557 }
 0x31b   :  { %v561_v27 = vpop.permute.xlu0 %560  ;;  %v565_v28 = vrot.slane %v558_v26, %v524_v14 }
 0x31c   :  { %v569_v29 = vrot.slane %v561_v27, %v524_v14 }
 0x31e   :  { %v570_v30 = vsel %vm530_vm1, %v569_v29, %v565_v28 }
 0x31f   :  { %v572_v31 = vsel %vm533_vm2, %v570_v30, 0.0 }
 0x320   :  { %573 = vadd.xlane.f32.xlu1 %v572_v31 }
 0x3ad   :  { %v574_v32 = vpop.xlane.xlu1 %573 }
 0x3ae   :  { %v579_v33 = vrot.slane %v574_v32, %v1024_v41  ;;  %v583_v34 = vrot.slane %v574_v32, %v1014_v13 }
 0x3b0   :  { %881 = vrcp.f32 %v579_v33 }
 0x3b1   :  { %883 = vrcp.f32 %v583_v34 }
 0x3ba   :  { %v882_v35 = vpop.eup %881 }
 0x3bb   :  { %v587_v36 = vmul.f32 %v882_v35, %v878_v24  ;;  %v884_v37 = vpop.eup %883 }
 0x3bc   :  { %v589_v38 = vmul.f32 %v884_v37, %v880_v25 }
 0x3bd   :  { %593 = vperm.xlu0 %876, %v587_v36  }
 0x3c1   :  { %596 = vperm.xlu0 %876, %v589_v38  }
 0x43c   :  { %v594_v39 = vpop.permute.xlu0 %593 }
 0x43d   :  { %v601_v42 = vrot.slane %v594_v39, %v524_v14 }
 0x440   :  { %v597_v40 = vpop.permute.xlu0 %596 }
 0x441   :  { %v605_v43 = vrot.slane %v597_v40, %v524_v14 }
 0x443   :  { %v606_v44 = vsel %vm530_vm1, %v605_v43, %v601_v42 }
 0x444   :  { %608 = vst.msk [vmem:[#allocation7] sm:$0x3] %vm533_vm2, %v606_v44 }
 0x445   :  { %940 = shalt.err (!%p937_p6)
}
 0x446   :  { %s941_s15 = scalar_lea.hbm %s1074_s3, 32 }
 0x447   :  { %p942_p7 = scmp.ne.s32.totalorder %s1074_s3, %s941_s15  ;;  %p945_p8 = scmp.lt.u32.totalorder %s941_s15, %s1074_s3 }
 0x449   :  { %p947_p9 = pnand %p945_p8, %p942_p7 }
 0x44b   :  { %950 = shalt.err (!%p947_p9)
}
 0x44c   :  { %618 = dma.vmem_to_hbm [thread:$0]  %s616_s11, 32, %s1074_s3, [#allocation4]  }
 0x44d   :  { %955 = dma.done.wait [#allocation4], 32  }
 0x44e   :  { %956 = vsyncadd [#allocation4], 4294967264 }
 0x44f   :  { %622 = vsyncpa [#allocation3], 1 }
 0x450   :  { %623 = vsyncpa [#allocation6], 1 }
 0x451   :  { %624 = vsyncpa [#allocation4], 1 }

</bundles_post_ra>
